<compile_context>
chip_gen: v6e
topology: v6e:2x2x1
jax: 0.10.0
libtpu: 0.0.40
codegen_flags: <defaults>
</compile_context>

<pallas_src>
import functools

import jax
import jax.numpy as jnp
from jax.experimental import pallas as pl
from jax.experimental.pallas import tpu as pltpu


def i3d_head_kernel(feat_ref, pool_ref, w_ref, b_ref, out_ref, *, inv_hw):
    # feat_ref : [TM, TC*HW]   rows x (channel-block, spatial) lane-dense view
    # pool_ref : [TC*HW, TC]   block-diagonal ones (spatial sum on the MXU)
    # w_ref    : [TC, Kp]      fc weight block (transposed, unscaled, K padded)
    # b_ref    : [1, Kp]       f32 bias (K padded)
    # out_ref  : [TM, Kp]      f32 logits; resident accumulator over channel axis
    c = pl.program_id(1)

    @pl.when(c == 0)
    def _init():
        out_ref[...] = jnp.zeros_like(out_ref)

    # Spatial sum pool on the MXU: [TM, TC*HW] @ [TC*HW, TC] -> [TM, TC].
    pooled = jnp.dot(feat_ref[...], pool_ref[...],
                     preferred_element_type=jnp.float32)

    # TODO(synk): dropout omitted (identity in eval mode); train-mode dropout
    # would use pltpu.prng_seed / pltpu.prng_random_bits here.

    out_ref[...] += jnp.dot(pooled.astype(w_ref.dtype), w_ref[...],
                            preferred_element_type=jnp.float32)

    @pl.when(c == pl.num_programs(1) - 1)
    def _finalize():
        # 1/HW turns the spatial sum into the average; bias added once, in f32.
        out_ref[...] = out_ref[...] * inv_hw + b_ref[...]


def _tpu_generation():
    """Best-effort (vmem_limit_bytes, tensorcores_per_chip) for the local TPU."""
    try:
        kind = jax.devices()[0].device_kind.lower()
    except Exception:
        kind = ""
    if "v7" in kind:
        return 48 * 1024 * 1024, 2       # 64 MiB physical per TC: leave headroom
    if ("v5 lite" in kind) or ("v5e" in kind) or ("v6" in kind):
        return 96 * 1024 * 1024, 1       # 128 MiB physical VMEM
    return None, 1                       # unknown: keep the compiler default


def _pick_block_c(C, HW, tm, Kp, itemsize, budget_bytes, block_c):
    """Largest channel block giving a legal lane-dense feature tile in budget."""
    sub = 16 if itemsize == 2 else 8     # sublane packing tile for the dtype
    if block_c is not None:
        assert C % block_c == 0, "block_c must divide C"
        assert block_c == C or (block_c % sub == 0 and (block_c * HW) % 128 == 0), (
            "block_c must be a multiple of the sublane tile and block_c*HW a "
            "multiple of 128 (or block_c == C)")
        return block_c

    cands = sorted({C} | {tc for tc in range(sub, C, sub)
                          if C % tc == 0 and (tc * HW) % 128 == 0}, reverse=True)

    def footprint(tc):
        feat = 2 * tm * tc * HW * itemsize    # double-buffered feature tile
        poolm = 2 * tc * HW * tc * itemsize   # block-diagonal pooling matrix
        w = 2 * tc * Kp * itemsize            # weight tile
        out = 2 * tm * Kp * 4                 # f32 resident output/accumulator
        return feat + poolm + w + out + 2 * Kp * 4

    for tc in cands:
        if footprint(tc) <= budget_bytes:
            return tc
    return cands[-1]                      # smallest legal option


def i3d_head_forward(feature_nchw, masks, weight, bias, *,
                     clip_seg_num, sample_rate, block_m=128, block_c=None):
    """feature_nchw: [B*T, C, H, W], masks: [B, M, T*R], weight: [K, C], bias: [K]."""
    N, C, H, W = feature_nchw.shape
    T, R = clip_seg_num, sample_rate
    assert N % T == 0, f"N={N} must be divisible by clip_seg_num={T}"
    B = N // T
    K = weight.shape[0]
    HW = H * W
    feat_dtype = feature_nchw.dtype
    itemsize = jnp.dtype(feat_dtype).itemsize

    vmem_limit, num_cores = _tpu_generation()
    budget = int(0.75 * (vmem_limit if vmem_limit is not None else 16 * 1024 * 1024))

    Kp = ((K + 127) // 128) * 128         # full 128-lane output tiles (unmasked vst)

    # --- row-block size: at least one block per TensorCore when possible ---
    assert block_m % 8 == 0
    if N <= block_m:
        if num_cores > 1 and N >= 16:
            tm = ((-(-N // num_cores) + 7) // 8) * 8   # >=2 row blocks on v7x
        else:
            tm = N                        # block == full dim is always legal
    else:
        tm = block_m                      # partial last block handled by Pallas

    tc = _pick_block_c(C, HW, tm, Kp, itemsize, budget, block_c)

    # --- glue: free reshape + tiny parameter prep (no feature copy/cast) ---
    feat = feature_nchw.reshape(N, C * HW)                       # lane-dense view
    pool = (jnp.arange(tc * HW, dtype=jnp.int32)[:, None] // HW
            == jnp.arange(tc, dtype=jnp.int32)[None, :]).astype(feat_dtype)
    wt = jnp.pad(jnp.transpose(weight), ((0, 0), (0, Kp - K))).astype(feat_dtype)
    b2 = jnp.pad(bias.astype(jnp.float32), (0, Kp - K))[None, :]

    grid = (pl.cdiv(N, tm), C // tc)

    out_nk = pl.pallas_call(
        functools.partial(i3d_head_kernel, inv_hw=float(1.0 / HW)),
        out_shape=jax.ShapeDtypeStruct((N, Kp), jnp.float32),
        grid_spec=pltpu.PrefetchScalarGridSpec(
            num_scalar_prefetch=0,
            grid=grid,
            in_specs=[
                pl.BlockSpec((tm, tc * HW), lambda i, c: (i, c)),   # feature
                pl.BlockSpec((tc * HW, tc), lambda i, c: (0, 0)),   # pooling matrix
                pl.BlockSpec((tc, Kp), lambda i, c: (c, 0)),        # weight
                pl.BlockSpec((1, Kp), lambda i, c: (0, 0)),         # bias
            ],
            out_specs=pl.BlockSpec((tm, Kp), lambda i, c: (i, 0)),
        ),
        compiler_params=pltpu.CompilerParams(
            dimension_semantics=("parallel", "arbitrary"),
            vmem_limit_bytes=vmem_limit),
    )(feat, pool, wt, b2)

    # Tiny post-processing on the logits only (N*K elements): slice off the K
    # padding, reshape/transpose to [B, K, T], mask, nearest upsample by R.
    score = out_nk[:, :K].reshape(B, T, K).transpose(0, 2, 1)        # [B, K, T]
    score = score * masks[:, 0:1, ::R].astype(score.dtype)
    score = jnp.repeat(score, R, axis=-1)                            # [B, K, T*R]
    return score[None]                                               # [1, B, K, T*R]


def i3d_head_reference(feature_nchw, masks, weight, bias, *,
                       clip_seg_num, sample_rate):
    """Pure-JAX reference mirroring the PyTorch forward (eval mode)."""
    N, C, H, W = feature_nchw.shape
    pooled = feature_nchw.astype(jnp.float32).mean(axis=(2, 3))      # [N, C]
    score = pooled @ weight.T + bias                                  # [N, K]
    B = N // clip_seg_num
    score = score.reshape(B, clip_seg_num, -1).transpose(0, 2, 1)     # [B, K, T]
    score = score * masks[:, 0:1, ::sample_rate]
    score = score[None]                                               # [1, B, K, T]
    return jnp.repeat(score, sample_rate, axis=-1)                    # nearest upsample


if __name__ == "__main__":
    # Small shapes consistent with the module.
    num_classes = 10
    in_channels = 32
    clip_seg_num = 8
    sample_rate = 4
    batch = 2
    H = W = 4

    key = jax.random.PRNGKey(0)
    k_feat, k_mask, k_w = jax.random.split(key, 3)

    N = batch * clip_seg_num
    feature = jax.random.normal(k_feat, (N, in_channels, H, W), jnp.float32)
    masks = (jax.random.uniform(k_mask, (batch, 1, clip_seg_num * sample_rate)) > 0.3
             ).astype(jnp.float32)

    # Deterministic parameter init (normal_init with std=0.01, zero bias).
    init_std = 0.01
    weight = init_std * jax.random.normal(k_w, (num_classes, in_channels),
                                          jnp.float32)
    bias = jnp.zeros((num_classes,), jnp.float32)

    ref = i3d_head_reference(feature, masks, weight, bias,
                             clip_seg_num=clip_seg_num, sample_rate=sample_rate)
    expected_shape = (1, batch, num_classes, clip_seg_num * sample_rate)

    # 1) Auto-derived block sizes (single reduction step at these tiny shapes).
    out = i3d_head_forward(feature, masks, weight, bias,
                           clip_seg_num=clip_seg_num, sample_rate=sample_rate)
    out = jax.block_until_ready(out)
    assert out.shape == expected_shape, out.shape
    err = jnp.max(jnp.abs(out - ref))
    assert jnp.allclose(out, ref, atol=5e-3, rtol=2e-2), f"auto mismatch: {err}"

    # 2) Explicit block_c=8 exercises the multi-step channel reduction with the
    #    resident output accumulator (grid = (rows, C//8)).
    out_blk = i3d_head_forward(feature, masks, weight, bias,
                               clip_seg_num=clip_seg_num,
                               sample_rate=sample_rate, block_c=8)
    out_blk = jax.block_until_ready(out_blk)
    err_blk = jnp.max(jnp.abs(out_blk - ref))
    assert jnp.allclose(out_blk, ref, atol=5e-3, rtol=2e-2), \
        f"blocked mismatch: {err_blk}"

    # 3) Feature already in bf16 in HBM (the only case where bf16 reads pay off).
    out_bf16 = i3d_head_forward(feature.astype(jnp.bfloat16), masks, weight, bias,
                                clip_seg_num=clip_seg_num,
                                sample_rate=sample_rate)
    out_bf16 = jax.block_until_ready(out_bf16)
    err_bf16 = jnp.max(jnp.abs(out_bf16 - ref))
    assert jnp.allclose(out_bf16, ref, atol=2e-2, rtol=1e-1), \
        f"bf16 mismatch: {err_bf16}"

    print("KERNEL_OK")
</pallas_src>

<mosaic_0001>
module attributes {stable_mosaic.version = 11 : i64} {
  func.func @i3d_head_kernel(%arg0: i32, %arg1: i32, %arg2: memref<16x512xf32, #tpu.memory_space<vmem>>, %arg3: memref<512x32xf32, #tpu.memory_space<vmem>>, %arg4: memref<32x128xf32, #tpu.memory_space<vmem>>, %arg5: memref<1x128xf32, #tpu.memory_space<vmem>>, %arg6: memref<16x128xf32, #tpu.memory_space<vmem>>) attributes {dimension_semantics = [#tpu.dimension_semantics<parallel>, #tpu.dimension_semantics<arbitrary>], iteration_bounds = array<i64: 1, 1>, scalar_prefetch = 0 : i64, scratch_operands = 0 : i64, tpu.core_type = #tpu.core_type<tc>, window_params = [{transform_indices = @transform_0, window_bounds = array<i64: 16, 512>}, {pipeline_mode = #tpu.pipeline_mode<synchronous>, transform_indices = @transform_1, window_bounds = array<i64: 512, 32>}, {transform_indices = @transform_2, window_bounds = array<i64: 32, 128>}, {pipeline_mode = #tpu.pipeline_mode<synchronous>, transform_indices = @transform_3, window_bounds = array<i64: 1, 128>}, {transform_indices = @transform_4, window_bounds = array<i64: 16, 128>}]} {
    %c0_i32 = arith.constant 0 : i32
    %0 = arith.cmpi eq, %arg1, %c0_i32 : i32
    %1 = arith.extui %0 : i1 to i32
    %c0_i32_0 = arith.constant 0 : i32
    %2 = arith.cmpi ne, %1, %c0_i32_0 : i32
    scf.if %2 {
      %cst_13 = arith.constant 0.000000e+00 : f32
      %14 = vector.broadcast %cst_13 : f32 to vector<16x128xf32>
      %c0_14 = arith.constant 0 : index
      %c0_15 = arith.constant 0 : index
      %15 = vector.load %arg6[%c0_14, %c0_15] : memref<16x128xf32, #tpu.memory_space<vmem>>, vector<16x128xf32>
      tpu.vector_store %arg6[%c0_14, %c0_15], %14 {strides = array<i32>} : memref<16x128xf32, #tpu.memory_space<vmem>>, vector<16x128xf32>,
    } else {
    }
    %c0 = arith.constant 0 : index
    %c0_1 = arith.constant 0 : index
    %3 = vector.load %arg2[%c0, %c0_1] : memref<16x512xf32, #tpu.memory_space<vmem>>, vector<16x512xf32>
    %c0_2 = arith.constant 0 : index
    %c0_3 = arith.constant 0 : index
    %4 = vector.load %arg3[%c0_2, %c0_3] : memref<512x32xf32, #tpu.memory_space<vmem>>, vector<512x32xf32>
    %cst = arith.constant dense<0.000000e+00> : vector<16x32xf32>
    %5 = tpu.matmul %3, %4, %cst {dimension_numbers = #tpu.dot_dimension_numbers<[1], [0], [0], [1], [0, 0, 1, 1], [], []>} : vector<16x512xf32>, vector<512x32xf32>, vector<16x32xf32> -> vector<16x32xf32>
    %c0_4 = arith.constant 0 : index
    %c0_5 = arith.constant 0 : index
    %6 = vector.load %arg6[%c0_4, %c0_5] : memref<16x128xf32, #tpu.memory_space<vmem>>, vector<16x128xf32>
    %c0_6 = arith.constant 0 : index
    %c0_7 = arith.constant 0 : index
    %7 = vector.load %arg4[%c0_6, %c0_7] : memref<32x128xf32, #tpu.memory_space<vmem>>, vector<32x128xf32>
    %cst_8 = arith.constant dense<0.000000e+00> : vector<16x128xf32>
    %8 = tpu.matmul %5, %7, %cst_8 {dimension_numbers = #tpu.dot_dimension_numbers<[1], [0], [0], [1], [0, 0, 1, 1], [], []>} : vector<16x32xf32>, vector<32x128xf32>, vector<16x128xf32> -> vector<16x128xf32>
    %9 = arith.addf %6, %8 : vector<16x128xf32>
    %c0_9 = arith.constant 0 : index
    %c0_10 = arith.constant 0 : index
    %10 = vector.load %arg6[%c0_9, %c0_10] : memref<16x128xf32, #tpu.memory_space<vmem>>, vector<16x128xf32>
    tpu.vector_store %arg6[%c0_9, %c0_10], %9 {strides = array<i32>} : memref<16x128xf32, #tpu.memory_space<vmem>>, vector<16x128xf32>,
    %c0_i32_11 = arith.constant 0 : i32
    %11 = arith.cmpi eq, %arg1, %c0_i32_11 : i32
    %12 = arith.extui %11 : i1 to i32
    %c0_i32_12 = arith.constant 0 : i32
    %13 = arith.cmpi ne, %12, %c0_i32_12 : i32
    scf.if %13 {
      %c0_13 = arith.constant 0 : index
      %c0_14 = arith.constant 0 : index
      %14 = vector.load %arg6[%c0_13, %c0_14] : memref<16x128xf32, #tpu.memory_space<vmem>>, vector<16x128xf32>
      %cst_15 = arith.constant 6.250000e-02 : f32
      %15 = vector.broadcast %cst_15 : f32 to vector<16x128xf32>
      %16 = arith.mulf %14, %15 : vector<16x128xf32>
      %c0_16 = arith.constant 0 : index
      %c0_17 = arith.constant 0 : index
      %17 = vector.load %arg5[%c0_16, %c0_17] : memref<1x128xf32, #tpu.memory_space<vmem>>, vector<1x128xf32>
      %18 = vector.broadcast %17 : vector<1x128xf32> to vector<16x128xf32>
      %19 = arith.addf %16, %18 : vector<16x128xf32>
      %c0_18 = arith.constant 0 : index
      %c0_19 = arith.constant 0 : index
      %20 = vector.load %arg6[%c0_18, %c0_19] : memref<16x128xf32, #tpu.memory_space<vmem>>, vector<16x128xf32>
      tpu.vector_store %arg6[%c0_18, %c0_19], %19 {strides = array<i32>} : memref<16x128xf32, #tpu.memory_space<vmem>>, vector<16x128xf32>,
    } else {
    }
    return
  }
  func.func @transform_0(%arg0: i32, %arg1: i32) -> (i32, i32) {
    %c0_i32 = arith.constant 0 : i32
    return %arg0, %arg1 : i32, i32
  }
  func.func @transform_1(%arg0: i32, %arg1: i32) -> (i32, i32) {
    %c0_i32 = arith.constant 0 : i32
    %c0_i32_0 = arith.constant 0 : i32
    %c0_i32_1 = arith.constant 0 : i32
    return %c0_i32, %c0_i32_0 : i32, i32
  }
  func.func @transform_2(%arg0: i32, %arg1: i32) -> (i32, i32) {
    %c0_i32 = arith.constant 0 : i32
    %c0_i32_0 = arith.constant 0 : i32
    return %arg1, %c0_i32 : i32, i32
  }
  func.func @transform_3(%arg0: i32, %arg1: i32) -> (i32, i32) {
    %c0_i32 = arith.constant 0 : i32
    %c0_i32_0 = arith.constant 0 : i32
    %c0_i32_1 = arith.constant 0 : i32
    return %c0_i32, %c0_i32_0 : i32, i32
  }
  func.func @transform_4(%arg0: i32, %arg1: i32) -> (i32, i32) {
    %c0_i32 = arith.constant 0 : i32
    %c0_i32_0 = arith.constant 0 : i32
    return %arg0, %c0_i32 : i32, i32
  }
}

</mosaic_0001>

<bundles_post_ra>
// kernel: tpu_custom_call.1
= control target key start
LH: loop header
LB: loop body
LE: loop exit
PB: predicated region body
PF: predicated region fallthrough
CT: control target
= control target key end

     0   :  { %s756_s0 = inlined_call_operand.vmem [shape: f32[16,512], index: 0, kind: input, shape index: {}]   ;;  %s757_s1 = inlined_call_operand.vmem [shape: f32[512,32], index: 1, kind: input, shape index: {}]   ;;  %s758_s2 = inlined_call_operand.vmem [shape: f32[32,128], index: 2, kind: input, shape index: {}]   ;;  %s759_s3 = inlined_call_operand.vmem [shape: f32[1,128], index: 3, kind: input, shape index: {}]   ;;  %s760_s4 = inlined_call_operand.hbm [shape: f32[16,128], index: 4, kind: output, shape index: {}]  }
   0x1   :  { %v63_v0 = vld [vmem:[%s757_s1 + $0xf8] sm:$0xff]  ;;  %v62_v4 = vld [vmem:[%s757_s1 + $0xf0] sm:$0xff]  ;;  %v61_v8 = vld [vmem:[%s757_s1 + $0xe8] sm:$0xff] }
   0x2   :  { %v95_v1 = vld [vmem:[%s757_s1 + $0x1f8] sm:$0xff]  ;;  %375 = vmatprep.subr.mxu0 %v63_v0  ;;  %v94_v5 = vld [vmem:[%s757_s1 + $0x1f0] sm:$0xff]  ;;  %v93_v9 = vld [vmem:[%s757_s1 + $0x1e8] sm:$0xff] }
   0x3   :  { %v47_v2 = vld [vmem:[%s757_s1 + $0x78] sm:$0xff]  ;;  %413 = vmatprep.subr.mxu1 %v95_v1  ;;  %v46_v6 = vld [vmem:[%s757_s1 + $0x70] sm:$0xff]  ;;  %v45_v10 = vld [vmem:[%s757_s1 + $0x68] sm:$0xff] }
   0x4   :  { %v79_v3 = vld [vmem:[%s757_s1 + $0x178] sm:$0xff]  ;;  %376 = vmatpush3.msra.mxu0 %v47_v2  ;;  %v78_v7 = vld [vmem:[%s757_s1 + $0x170] sm:$0xff]  ;;  %v77_v11 = vld [vmem:[%s757_s1 + $0x168] sm:$0xff] }
   0x5   :  { %414 = vmatpush3.msra.mxu1 %v79_v3  ;;  %377 = vmatprep.subr.mxu0 %v62_v4  ;;  %v60_v12 = vld [vmem:[%s757_s1 + $0xe0] sm:$0xff]  ;;  %v59_v16 = vld [vmem:[%s757_s1 + $0xd8] sm:$0xff]  ;;  %v58_v20 = vld [vmem:[%s757_s1 + $0xd0] sm:$0xff] }
   0x6   :  { %415 = vmatprep.subr.mxu1 %v94_v5  ;;  %378 = vmatpush3.msra.mxu0 %v46_v6  ;;  %v92_v13 = vld [vmem:[%s757_s1 + $0x1e0] sm:$0xff]  ;;  %v91_v17 = vld [vmem:[%s757_s1 + $0x1d8] sm:$0xff]  ;;  %v90_v21 = vld [vmem:[%s757_s1 + $0x1d0] sm:$0xff] }
   0x7   :  { %416 = vmatpush3.msra.mxu1 %v78_v7  ;;  %379 = vmatprep.subr.mxu0 %v61_v8  ;;  %v44_v14 = vld [vmem:[%s757_s1 + $0x60] sm:$0xff]  ;;  %v43_v18 = vld [vmem:[%s757_s1 + $0x58] sm:$0xff]  ;;  %v42_v22 = vld [vmem:[%s757_s1 + $0x50] sm:$0xff] }
   0x8   :  { %417 = vmatprep.subr.mxu1 %v93_v9  ;;  %v76_v15 = vld [vmem:[%s757_s1 + $0x160] sm:$0xff]  ;;  %380 = vmatpush3.msra.mxu0 %v45_v10  ;;  %v75_v19 = vld [vmem:[%s757_s1 + $0x158] sm:$0xff]  ;;  %v74_v23 = vld [vmem:[%s757_s1 + $0x150] sm:$0xff] }
   0x9   :  { %418 = vmatpush3.msra.mxu1 %v77_v11  ;;  %381 = vmatprep.subr.mxu0 %v60_v12  ;;  %v57_v24 = vld [vmem:[%s757_s1 + $0xc8] sm:$0xff]  ;;  %v56_v28 = vld [vmem:[%s757_s1 + $0xc0] sm:$0xff]  ;;  %v55_v32 = vld [vmem:[%s757_s1 + $0xb8] sm:$0xff] }
   0xa   :  { %419 = vmatprep.subr.mxu1 %v92_v13  ;;  %382 = vmatpush3.msra.mxu0 %v44_v14  ;;  %v89_v25 = vld [vmem:[%s757_s1 + $0x1c8] sm:$0xff]  ;;  %v88_v29 = vld [vmem:[%s757_s1 + $0x1c0] sm:$0xff]  ;;  %v87_v33 = vld [vmem:[%s757_s1 + $0x1b8] sm:$0xff] }
   0xb   :  { %420 = vmatpush3.msra.mxu1 %v76_v15  ;;  %383 = vmatprep.subr.mxu0 %v59_v16  ;;  %v41_v26 = vld [vmem:[%s757_s1 + $0x48] sm:$0xff]  ;;  %v40_v30 = vld [vmem:[%s757_s1 + $0x40] sm:$0xff]  ;;  %v39_v34 = vld [vmem:[%s757_s1 + $0x38] sm:$0xff] }
   0xc   :  { %421 = vmatprep.subr.mxu1 %v91_v17  ;;  %384 = vmatpush3.msra.mxu0 %v43_v18  ;;  %v73_v27 = vld [vmem:[%s757_s1 + $0x148] sm:$0xff]  ;;  %v72_v31 = vld [vmem:[%s757_s1 + $0x140] sm:$0xff]  ;;  %v71_v35 = vld [vmem:[%s757_s1 + $0x138] sm:$0xff] }
   0xd   :  { %422 = vmatpush3.msra.mxu1 %v75_v19  ;;  %385 = vmatprep.subr.mxu0 %v58_v20  ;;  %v54_v36 = vld [vmem:[%s757_s1 + $0xb0] sm:$0xff]  ;;  %v53_v40 = vld [vmem:[%s757_s1 + $0xa8] sm:$0xff]  ;;  %v52_v44 = vld [vmem:[%s757_s1 + $0xa0] sm:$0xff] }
   0xe   :  { %423 = vmatprep.subr.mxu1 %v90_v21  ;;  %386 = vmatpush3.msra.mxu0 %v42_v22  ;;  %v86_v37 = vld [vmem:[%s757_s1 + $0x1b0] sm:$0xff]  ;;  %v85_v41 = vld [vmem:[%s757_s1 + $0x1a8] sm:$0xff]  ;;  %v84_v45 = vld [vmem:[%s757_s1 + $0x1a0] sm:$0xff] }
   0xf   :  { %424 = vmatpush3.msra.mxu1 %v74_v23  ;;  %387 = vmatprep.subr.mxu0 %v57_v24  ;;  %v38_v38 = vld [vmem:[%s757_s1 + $0x30] sm:$0xff]  ;;  %v37_v42 = vld [vmem:[%s757_s1 + $0x28] sm:$0xff]  ;;  %v36_v46 = vld [vmem:[%s757_s1 + $0x20] sm:$0xff] }
  0x10   :  { %425 = vmatprep.subr.mxu1 %v89_v25  ;;  %388 = vmatpush3.msra.mxu0 %v41_v26  ;;  %v70_v39 = vld [vmem:[%s757_s1 + $0x130] sm:$0xff]  ;;  %v69_v43 = vld [vmem:[%s757_s1 + $0x128] sm:$0xff]  ;;  %v68_v47 = vld [vmem:[%s757_s1 + $0x120] sm:$0xff] }
  0x11   :  { %426 = vmatpush3.msra.mxu1 %v73_v27  ;;  %389 = vmatprep.subr.mxu0 %v56_v28  ;;  %v51_v48 = vld [vmem:[%s757_s1 + $0x98] sm:$0xff]  ;;  %v50_v52 = vld [vmem:[%s757_s1 + $0x90] sm:$0xff] }
  0x12   :  { %427 = vmatprep.subr.mxu1 %v88_v29  ;;  %390 = vmatpush3.msra.mxu0 %v40_v30  ;;  %v83_v49 = vld [vmem:[%s757_s1 + $0x198] sm:$0xff]  ;;  %v82_v53 = vld [vmem:[%s757_s1 + $0x190] sm:$0xff] }
  0x13   :  { %428 = vmatpush3.msra.mxu1 %v72_v31  ;;  %391 = vmatprep.subr.mxu0 %v55_v32  ;;  %v35_v50 = vld [vmem:[%s757_s1 + $0x18] sm:$0xff] }
  0x14   :  { %429 = vmatprep.subr.mxu1 %v87_v33  ;;  %392 = vmatpush3.msra.mxu0 %v39_v34  ;;  %v67_v51 = vld [vmem:[%s757_s1 + $0x118] sm:$0xff] }
  0x15   :  { %430 = vmatpush3.msra.mxu1 %v71_v35  ;;  %393 = vmatprep.subr.mxu0 %v54_v36 }
  0x16   :  { %431 = vmatprep.subr.mxu1 %v86_v37  ;;  %394 = vmatpush3.msra.mxu0 %v38_v38 }
  0x17   :  { %432 = vmatpush3.msra.mxu1 %v70_v39  ;;  %395 = vmatprep.subr.mxu0 %v53_v40 }
  0x18   :  { %433 = vmatprep.subr.mxu1 %v85_v41  ;;  %396 = vmatpush3.msra.mxu0 %v37_v42 }
  0x19   :  { %434 = vmatpush3.msra.mxu1 %v69_v43  ;;  %397 = vmatprep.subr.mxu0 %v52_v44 }
  0x1a   :  { %435 = vmatprep.subr.mxu1 %v84_v45  ;;  %398 = vmatpush3.msra.mxu0 %v36_v46 }
  0x1b   :  { %436 = vmatpush3.msra.mxu1 %v68_v47 }
  0x1c   :  { %9 = vsyncpa [#allocation3], 0  ;;  %399 = vmatprep.subr.mxu0 %v51_v48  ;;  %437 = vmatprep.subr.mxu1 %v83_v49  ;;  %v34_v54 = vld [vmem:[%s757_s1 + $0x10] sm:$0xff]  ;;  %v49_v56 = vld [vmem:[%s757_s1 + $0x88] sm:$0xff]  ;;  %vm252_vm0 = vcmask 261120   ;;  %s494_s10 = smov [#allocation2]  }
  0x1d   :  { %v66_v55 = vld [vmem:[%s757_s1 + $0x110] sm:$0xff]  ;;  %400 = vmatpush3.msra.mxu0 %v35_v50  ;;  %438 = vmatpush3.msra.mxu1 %v67_v51  ;;  %v81_v57 = vld [vmem:[%s757_s1 + $0x188] sm:$0xff]  ;;  %v48_v60 = vld [vmem:[%s757_s1 + $0x80] sm:$0xff]  ;;  %s361_s11 = sshll.u32 %s494_s10, 4  ;;  %s362_s11 = int_to_ptr.vmem [resolvable:$true] %s361_s11 }
  0x1e   :  { %401 = vmatprep.subr.mxu0 %v50_v52  ;;  %439 = vmatprep.subr.mxu1 %v82_v53  ;;  %v33_v58 = vld [vmem:[%s757_s1 + $0x8] sm:$0xff]  ;;  %v80_v61 = vld [vmem:[%s757_s1 + $0x180] sm:$0xff]  ;;  %v27_v1 = vld [vmem:[%s756_s0 + $0x18] sm:$0xff]  ;;  %s472_s12 = scalar_lea.vmem %s362_s11, 256  ;;  %p477_p1 = scmp.lt.s32.totalorder %s362_s11, %s362_s11 }
  0x1f   :  { %v65_v59 = vld [vmem:[%s757_s1 + $0x108] sm:$0xff]  ;;  %402 = vmatpush3.msra.mxu0 %v34_v54  ;;  %440 = vmatpush3.msra.mxu1 %v66_v55  ;;  %v32_v62 = vld [vmem:[%s757_s1] sm:$0xff]  ;;  %v26_v3 = vld [vmem:[%s756_s0 + $0x10] sm:$0xff]  ;;  %p473_p0 = scmp.ne.s32.totalorder %s362_s11, %s472_s12  ;;  %p478_p2 = scmp.lt.s32.totalorder %s472_s12, %s472_s12 }
  0x20   :  { %403 = vmatprep.subr.mxu0 %v49_v56  ;;  %441 = vmatprep.subr.mxu1 %v81_v57  ;;  %v25_v63 = vld [vmem:[%s756_s0 + $0x8] sm:$0xff]  ;;  %v64_v0 = vld [vmem:[%s757_s1 + $0x100] sm:$0xff]  ;;  %v31_v5 = vld [vmem:[%s756_s0 + $0x38] sm:$0xff] }
  0x21   :  { %404 = vmatpush3.msra.mxu0 %v33_v58  ;;  %442 = vmatpush3.msra.mxu1 %v65_v59  ;;  %v24_v2 = vld [vmem:[%s756_s0] sm:$0xff]  ;;  %v29_v4 = vld [vmem:[%s756_s0 + $0x28] sm:$0xff]  ;;  %v30_v7 = vld [vmem:[%s756_s0 + $0x30] sm:$0xff]  ;;  %p479_p3 = por %p478_p2, %p477_p1 }
  0x22   :  { %405 = vmatprep.subr.mxu0 %v48_v60  ;;  %443 = vmatprep.subr.mxu1 %v80_v61  ;;  %v28_v6 = vld [vmem:[%s756_s0 + $0x20] sm:$0xff]  ;;  %v251_v8 = vld [vmem:[%s758_s2 + $0x18] sm:$0xff]  ;;  %v250_v9 = vld [vmem:[%s758_s2 + $0x10] sm:$0xff] }
  0x23   :  { %406 = vmatpush3.msra.mxu0 %v32_v62  ;;  %160 = vmatprep.mubr.f32.mxu0 %v25_v63  ;;  %v249_v10 = vld [vmem:[%s758_s2 + $0x8] sm:$0xff]  ;;  %v248_v11 = vld [vmem:[%s758_s2] sm:$0xff]  ;;  %p480_p4 = pnand %p479_p3, %p473_p0 }
  0x24   :  { %444 = vmatpush3.msra.mxu1 %v64_v0  ;;  %235 = vmatprep.mubr.f32.mxu1 %v27_v1  ;;  %v374_v27 = vld [vmem:[%s759_s3] ss:$0 sm:$0xff] }
  0x25   :  { %161 = vmatmul.mubr.f32.vlgmr.msra.gmra.mxu0 %v24_v2  ;;  %236 = vmatmul.mubr.f32.vlgmr.msra.gmra.mxu1 %v26_v3 }
  0x26   :  { %165 = vmatprep.mubr.f32.mxu0 %v29_v4  ;;  %240 = vmatprep.mubr.f32.mxu1 %v31_v5 }
  0x27   :  { %457 = vmatprep.subr.mxu0 %v251_v8 }
  0x28   :  { %458 = vmatpush3.msra.mxu0 %v251_v8 }
  0x29   :  { %166 = vmatmul.mubr.f32.gmra.mxu0 %v28_v6  ;;  %241 = vmatmul.mubr.f32.gmra.mxu1 %v30_v7 }
  0x2a   :  { %459 = vmatprep.subr.mxu0 %v250_v9 }
  0x2b   :  { %460 = vmatpush3.msra.mxu0 %v250_v9 }
  0x2c   :  { %461 = vmatprep.subr.mxu0 %v249_v10 }
  0x2d   :  { %462 = vmatpush3.msra.mxu0 %v249_v10 }
  0x2e   :  { %463 = vmatprep.subr.mxu0 %v248_v11 }
  0x2f   :  { %464 = vmatpush3.msra.mxu0 %v248_v11 }
  0xe5   :  { %v407_v12 = vpop.f32.mrf.mxu0  ;;  %v445_v13 = vpop.f32.mrf.mxu1 }
  0xe7   :  { %v408_v14 = vpop.f32.mrf.mxu0  ;;  %v446_v15 = vpop.f32.mrf.mxu1 }
  0xe8   :  { %v409_v16 = vadd.f32 %v408_v14, %v407_v12  ;;  %v447_v17 = vadd.f32 %v446_v15, %v445_v13 }
  0xe9   :  { %v410_v18 = vpop.f32.mrf.mxu0  ;;  %v448_v19 = vpop.f32.mrf.mxu1 }
  0xea   :  { %v238_v20 = vadd.f32 %v447_v17, %v409_v16 }
  0xeb   :  { %v411_v21 = vpop.f32.mrf.mxu0  ;;  %v449_v22 = vpop.f32.mrf.mxu1 }
  0xec   :  { %v412_v23 = vadd.f32 %v411_v21, %v410_v18  ;;  %v450_v24 = vadd.f32 %v449_v22, %v448_v19  ;;  %465 = vmatprep.mubr.msk.f32.mxu0 %vm252_vm0, %v238_v20 }
  0xee   :  { %v243_v25 = vadd.f32 %v450_v24, %v412_v23 }
  0xf0   :  { %466 = vmatmul.mubr.msk.f32.vlgmr.msra.gmra.mxu0 %vm252_vm0, %v243_v25 }
 0x1b0   :  { %v467_v26 = vpop.f32.mrf.mxu0 }
 0x1b1   :  { %v344_v29 = vmul.f32 0.0625, %v467_v26 }
 0x1b2   :  { %v325_v28 = vpop.f32.mrf.mxu0 }
 0x1b3   :  { %v353_v30 = vadd.f32 %v374_v27, %v344_v29  ;;  %v343_v31 = vmul.f32 0.0625, %v325_v28 }
 0x1b5   :  { %355 = vst [vmem:[#allocation2 + $0x8] sm:$0xff] %v353_v30  ;;  %v352_v32 = vadd.f32 %v374_v27, %v343_v31 }
 0x1b7   :  { %354 = vst [vmem:[#allocation2] sm:$0xff] %v352_v32 }
 0x1b8   :  { %483 = shalt.err (!%p480_p4)
}
 0x1b9   :  { %s495_s13 = smov 128   ;;  %s496_s14 = smov 8  }
 0x1ba   :  { %367 = dma.vmem_to_hbm [thread:$0]  %s362_s11, 256, %s760_s4, [#allocation3], %s495_s13, %s495_s13, %s496_s14  }
 0x1bb   :  { %492 = dma.done.wait [#allocation3], 256  }
 0x1bc   :  { %493 = vsyncadd [#allocation3], 4294967040 }
 0x1bd   :  { %371 = vsyncpa [#allocation3], 1 }

</bundles_post_ra>
